<compile_context>
chip_gen: v7x
topology: tpu7x:2x2x1
jax: 0.10.0
libtpu: 0.0.40
codegen_flags: <defaults>
</compile_context>

<pallas_src>
import functools

import numpy as np
import jax
import jax.numpy as jnp
from jax.experimental import pallas as pl
from jax.experimental.pallas import tpu as pltpu

KERNEL_SIZE = 7
SIGMA = 1.5
DATA_RANGE = 1.0
K1, K2 = 0.01, 0.03


def _cdiv(a, b):
    return -(-a // b)


def _round_up(a, m):
    return _cdiv(a, m) * m


def _gaussian_taps(kernel_size: int, sigma: float):
    # matches torchmetrics _gaussian(): positions (1-k)/2 ... (k-1)/2, normalized
    dist = np.arange((1 - kernel_size) / 2.0, (1 + kernel_size) / 2.0, 1.0,
                     dtype=np.float64)
    g = np.exp(-((dist / sigma) ** 2) / 2.0)
    g = g / g.sum()
    return g.astype(np.float32)


def _filter_matrix_t(h, w, kernel_size, sigma, ohow_pad):
    """(H*W, OHOW_pad) matrix: valid 2-D gaussian filter as rows @ T.

    Columns >= OH*OW are zero padding (masked out of the row-sum in-kernel).
    """
    taps = _gaussian_taps(kernel_size, sigma)
    kern2d = np.outer(taps, taps).astype(np.float32)
    oh, ow = h - kernel_size + 1, w - kernel_size + 1
    t2 = np.zeros((oh * ow, h, w), dtype=np.float32)
    for oi in range(oh):
        for oj in range(ow):
            t2[oi * ow + oj, oi:oi + kernel_size, oj:oj + kernel_size] = kern2d
    t2 = t2.reshape(oh * ow, h * w)
    t2t = np.zeros((h * w, ohow_pad), dtype=np.float32)
    t2t[:, :oh * ow] = t2.T
    return t2t


def _vmem_capacity_bytes():
    try:
        return int(pltpu.get_tpu_info().vmem_capacity_bytes)
    except Exception:
        return 64 * 1024 * 1024          # conservative (v7x per-TC VMEM)


def _choose_tb(hw, ohow_pad, bb, in_itemsize, vmem_cap):
    """Images per block (sublane axis); multiple of the dtype sublane pack."""
    align = max(8, 32 // max(1, in_itemsize))       # 8 f32 / 16 bf16 / 32 int8
    # Generous per-image live-VMEM estimate: double-buffered inputs + f32
    # working set + bf16 hi/lo copies + filtered moments + SSIM intermediates.
    per_img = hw * (4 * in_itemsize + 60) + 112 * ohow_pad
    budget = max(per_img, int(0.4 * vmem_cap) - 4 * hw * ohow_pad)
    tb = budget // per_img
    tb = min(tb, 2048)
    # Prefer >= 4 blocks (2 cores x >= 2 pipelined steps) when the batch is
    # large enough, so BlockSpec double-buffering can hide the HBM fetch.
    if bb >= 4 * align:
        tb = min(tb, _round_up(_cdiv(bb, 4), align))
    tb = min(tb, _round_up(bb, align))
    tb = max(align, (tb // align) * align)
    return tb


def _ssim_sum_kernel(t2_hbm, x_ref, y_ref, out_ref, t2_vmem, copy_sem, *,
                     c1, c2, bb, tb, ohow, ohow_pad, n_steps):
    """Accumulates per-lane SSIM-map sums for TB images per grid step."""
    p = pl.program_id(0)          # parallel (per-core) axis
    s = pl.program_id(1)          # reduction axis

    @pl.when(s == 0)
    def _init():
        out_ref[...] = jnp.zeros_like(out_ref)
        # Constant filter matrix: DMA'd once per core into a single
        # (non-double-buffered) VMEM scratch, held as bf16 [T_hi | T_lo].
        cp = pltpu.make_async_copy(t2_hbm, t2_vmem, copy_sem)
        cp.start()
        cp.wait()

    x = x_ref[...].astype(jnp.float32)        # (TB, HW)
    y = y_ref[...].astype(jnp.float32)        # (TB, HW)

    t2_cat = t2_vmem[...]                     # (HW, 2*OHOW_pad) bf16
    t2_hi = t2_cat[:, :ohow_pad]              # (HW, OHOW_pad)   bf16

    # All five filtered moments share the LHS stack; bf16x3 split keeps ~f32
    # accuracy at 3 MXU passes (vs 6 for Precision.HIGHEST f32 matmuls).
    big = jnp.concatenate([x, y, x * x, y * y, x * y], axis=0)   # (5*TB, HW)
    big_hi = big.astype(jnp.bfloat16)
    big_lo = (big - big_hi.astype(jnp.float32)).astype(jnp.bfloat16)

    mom_a = jnp.dot(big_hi, t2_cat,
                    preferred_element_type=jnp.float32)   # (5*TB, 2*OHOW_pad)
    mom_b = jnp.dot(big_lo, t2_hi,
                    preferred_element_type=jnp.float32)   # (5*TB, OHOW_pad)
    mom = mom_a[:, :ohow_pad] + mom_a[:, ohow_pad:] + mom_b

    mu_x = mom[0 * tb:1 * tb]
    mu_y = mom[1 * tb:2 * tb]
    e_xx = mom[2 * tb:3 * tb]
    e_yy = mom[3 * tb:4 * tb]
    e_xy = mom[4 * tb:5 * tb]

    sig_xx = e_xx - mu_x * mu_x
    sig_yy = e_yy - mu_y * mu_y
    sig_xy = e_xy - mu_x * mu_y

    num = (2.0 * mu_x * mu_y + c1) * (2.0 * sig_xy + c2)
    den = (mu_x * mu_x + mu_y * mu_y + c1) * (sig_xx + sig_yy + c2)

    # EUP reciprocal + one Newton refinement (f32-level accuracy, frees VALU).
    r = pl.reciprocal(den, approx=True)
    r = r * (2.0 - den * r)
    ssim_map = num * r                                     # (TB, OHOW_pad)

    # Zero-padded filter columns would contribute ssim == 1; mask them out.
    if ohow_pad > ohow:
        col = jax.lax.broadcasted_iota(jnp.int32, (tb, ohow_pad), 1)
        ssim_map = jnp.where(col < ohow, ssim_map, 0.0)

    start = (p * n_steps + s) * tb

    @pl.when(start + tb > bb)      # only the block that contains padded images
    def _masked_acc():
        row = jax.lax.broadcasted_iota(jnp.int32, (tb, ohow_pad), 0)
        masked = jnp.where(start + row < bb, ssim_map, 0.0)
        out_ref[...] += jnp.sum(masked, axis=0, keepdims=True)[None]

    @pl.when(start + tb <= bb)
    def _plain_acc():
        out_ref[...] += jnp.sum(ssim_map, axis=0, keepdims=True)[None]


def ssim_loss(img1, img2):
    """1 - mean SSIM; img1/img2: (num_z, batch_s, pred_t, H, W, C)."""
    num_z, batch_s, pred_t, h, w, c = img1.shape
    k = KERNEL_SIZE
    oh, ow = h - k + 1, w - k + 1
    assert oh > 0 and ow > 0, "image smaller than SSIM window"
    hw, ohow = h * w, oh * ow
    ohow_pad = max(128, _round_up(ohow, 128))
    bb = num_z * batch_s * pred_t * c        # channels fold into the batch axis

    # Images as rows of a (B, H*W) matrix; free reshape when C == 1 (no extra
    # HBM transpose pass) and no f32 upcast here (cast happens in-kernel).
    if c == 1:
        x = img1.reshape(bb, hw)
        y = img2.reshape(bb, hw)
    else:
        # TODO(synk): C > 1 still needs one transpose pass to split channels
        # into separate single-channel images (torchmetrics layout).
        x = jnp.transpose(img1, (0, 1, 2, 5, 3, 4)).reshape(bb, hw)
        y = jnp.transpose(img2, (0, 1, 2, 5, 3, 4)).reshape(bb, hw)

    in_itemsize = x.dtype.itemsize
    vmem_cap = _vmem_capacity_bytes()
    tb = _choose_tb(hw, ohow_pad, bb, in_itemsize, vmem_cap)

    n_blocks = _cdiv(bb, tb)
    n_par = 2 if n_blocks >= 2 else 1        # both TensorCores on v7x
    n_steps = _cdiv(n_blocks, n_par)
    bpad = n_par * n_steps * tb
    if bpad > bb:
        x = jnp.pad(x, ((0, bpad - bb), (0, 0)))
        y = jnp.pad(y, ((0, bpad - bb), (0, 0)))

    # Constant filter matrix as bf16 hi/lo halves, concatenated on the lane
    # axis so the wide matmul computes hi*T_hi and hi*T_lo in one call.
    t2_f32 = jnp.asarray(_filter_matrix_t(h, w, k, SIGMA, ohow_pad))
    t2_hi = t2_f32.astype(jnp.bfloat16)
    t2_lo = (t2_f32 - t2_hi.astype(jnp.float32)).astype(jnp.bfloat16)
    t2_cat = jnp.concatenate([t2_hi, t2_lo], axis=1)       # (HW, 2*OHOW_pad)

    c1 = (K1 * DATA_RANGE) ** 2
    c2 = (K2 * DATA_RANGE) ** 2

    kernel = functools.partial(_ssim_sum_kernel, c1=c1, c2=c2, bb=bb, tb=tb,
                               ohow=ohow, ohow_pad=ohow_pad, n_steps=n_steps)

    # Generous live-VMEM estimate; scoped limit stays within the generation's
    # physical VMEM (~48 MiB on v7x's 64 MiB/TC, up to ~100 MiB on v5e/v6e).
    vmem_est = (tb * (hw * (4 * in_itemsize + 60) + 112 * ohow_pad)
                + 4 * hw * ohow_pad)
    vmem_limit = int(min(max(int(1.4 * vmem_est), 32 * 1024 * 1024),
                         int(0.8 * vmem_cap)))

    partials = pl.pallas_call(
        kernel,
        out_shape=jax.ShapeDtypeStruct((n_par, 1, ohow_pad), jnp.float32),
        grid_spec=pltpu.PrefetchScalarGridSpec(
            num_scalar_prefetch=0,
            grid=(n_par, n_steps),
            in_specs=[
                # constant filter matrix: raw HBM ref, copied once per core
                pl.BlockSpec(memory_space=pl.ANY),
                pl.BlockSpec((tb, hw), lambda p, s: (p * n_steps + s, 0)),
                pl.BlockSpec((tb, hw), lambda p, s: (p * n_steps + s, 0)),
            ],
            out_specs=pl.BlockSpec((1, 1, ohow_pad), lambda p, s: (p, 0, 0)),
            scratch_shapes=[
                pltpu.VMEM((hw, 2 * ohow_pad), jnp.bfloat16),
                pltpu.SemaphoreType.DMA,
            ],
        ),
        compiler_params=pltpu.CompilerParams(
            dimension_semantics=("parallel", "arbitrary"),
            vmem_limit_bytes=vmem_limit),
    )(t2_cat, x, y)

    mean_ssim = jnp.sum(partials) / jnp.float32(bb * ohow)
    return (1.0 - mean_ssim).astype(jnp.float32)


def _reference_ssim_loss(img1, img2):
    """Pure-numpy (float64) reference of the same math (sanity check)."""
    num_z, batch_s, pred_t, h, w, c = img1.shape
    x = np.transpose(np.asarray(img1), (0, 1, 2, 5, 3, 4)).reshape(-1, h, w)
    y = np.transpose(np.asarray(img2), (0, 1, 2, 5, 3, 4)).reshape(-1, h, w)
    taps = np.asarray(_gaussian_taps(KERNEL_SIZE, SIGMA), dtype=np.float64)
    kern2d = np.outer(taps, taps)
    c1 = (K1 * DATA_RANGE) ** 2
    c2 = (K2 * DATA_RANGE) ** 2
    oh, ow = h - KERNEL_SIZE + 1, w - KERNEL_SIZE + 1

    def filt(a):
        out = np.zeros((a.shape[0], oh, ow), dtype=np.float64)
        for i in range(KERNEL_SIZE):
            for j in range(KERNEL_SIZE):
                out += kern2d[i, j] * a[:, i:i + oh, j:j + ow]
        return out

    xf, yf = x.astype(np.float64), y.astype(np.float64)
    mu_x, mu_y = filt(xf), filt(yf)
    sxx = filt(xf * xf) - mu_x * mu_x
    syy = filt(yf * yf) - mu_y * mu_y
    sxy = filt(xf * yf) - mu_x * mu_y
    ssim = ((2 * mu_x * mu_y + c1) * (2 * sxy + c2)) / \
           ((mu_x * mu_x + mu_y * mu_y + c1) * (sxx + syy + c2))
    return 1.0 - ssim.mean()


if __name__ == "__main__":
    key = jax.random.PRNGKey(0)
    k1, k2 = jax.random.split(key)
    # (num_z, batch_s, pred_t, H, W, C) = (2, 2, 1, 16, 16, 1)
    shape = (2, 2, 1, 16, 16, 1)
    img1 = jax.random.uniform(k1, shape, dtype=jnp.float32)
    img2 = jnp.clip(img1 + 0.05 * jax.random.normal(k2, shape, jnp.float32),
                    0.0, 1.0)

    loss = jax.block_until_ready(ssim_loss(img1, img2))
    ref = _reference_ssim_loss(img1, img2)
    assert np.isfinite(float(loss))
    assert abs(float(loss) - float(ref)) < 1e-4, (float(loss), float(ref))
    print("KERNEL_OK")
</pallas_src>

<mosaic_0001>
module attributes {stable_mosaic.version = 11 : i64} {
  func.func @_ssim_sum_kernel(%arg0: i32, %arg1: i32, %arg2: memref<256x256xbf16, #tpu.memory_space<any>>, %arg3: memref<8x256xf32, #tpu.memory_space<vmem>>, %arg4: memref<8x256xf32, #tpu.memory_space<vmem>>, %arg5: memref<1x1x128xf32, #tpu.memory_space<vmem>>, %arg6: memref<256x256xbf16, #tpu.memory_space<vmem>>, %arg7: memref<!tpu.dma_semaphore, #tpu.memory_space<semaphore_mem>>) attributes {dimension_semantics = [#tpu.dimension_semantics<parallel>, #tpu.dimension_semantics<arbitrary>], iteration_bounds = array<i64: 1, 1>, scalar_prefetch = 0 : i64, scratch_operands = 2 : i64, tpu.core_type = #tpu.core_type<tc>, window_params = [{}, {transform_indices = @transform_1, window_bounds = array<i64: 8, 256>}, {transform_indices = @transform_2, window_bounds = array<i64: 8, 256>}, {transform_indices = @transform_3, window_bounds = array<i64: 1, 1, 128>}]} {
    %c0_i32 = arith.constant 0 : i32
    %0 = arith.cmpi eq, %arg1, %c0_i32 : i32
    %1 = arith.extui %0 : i1 to i32
    %c0_i32_0 = arith.constant 0 : i32
    %2 = arith.cmpi ne, %1, %c0_i32_0 : i32
    scf.if %2 {
      %cst_20 = arith.constant 0.000000e+00 : f32
      %73 = vector.broadcast %cst_20 : f32 to vector<1x1x128xf32>
      %c0_21 = arith.constant 0 : index
      %c0_22 = arith.constant 0 : index
      %c0_23 = arith.constant 0 : index
      %74 = vector.load %arg5[%c0_21, %c0_22, %c0_23] : memref<1x1x128xf32, #tpu.memory_space<vmem>>, vector<1x1x128xf32>
      tpu.vector_store %arg5[%c0_21, %c0_22, %c0_23], %73 {strides = array<i32>} : memref<1x1x128xf32, #tpu.memory_space<vmem>>, vector<1x1x128xf32>,
      tpu.enqueue_dma source(%arg2 : memref<256x256xbf16, #tpu.memory_space<any>>) target(%arg6 : memref<256x256xbf16, #tpu.memory_space<vmem>>) target_semaphore(%arg7 : memref<!tpu.dma_semaphore, #tpu.memory_space<semaphore_mem>>)
      tpu.wait_dma2 semaphore(%arg7 : memref<!tpu.dma_semaphore, #tpu.memory_space<semaphore_mem>>) src(%arg2 : memref<256x256xbf16, #tpu.memory_space<any>>) dst(%arg6 : memref<256x256xbf16, #tpu.memory_space<vmem>>)
    } else {
    }
    %c0 = arith.constant 0 : index
    %c0_1 = arith.constant 0 : index
    %3 = vector.load %arg3[%c0, %c0_1] : memref<8x256xf32, #tpu.memory_space<vmem>>, vector<8x256xf32>
    %c0_2 = arith.constant 0 : index
    %c0_3 = arith.constant 0 : index
    %4 = vector.load %arg4[%c0_2, %c0_3] : memref<8x256xf32, #tpu.memory_space<vmem>>, vector<8x256xf32>
    %c0_4 = arith.constant 0 : index
    %c0_5 = arith.constant 0 : index
    %5 = vector.load %arg6[%c0_4, %c0_5] : memref<256x256xbf16, #tpu.memory_space<vmem>>, vector<256x256xbf16>
    %6 = vector.extract_strided_slice %5 {offsets = [0, 0], sizes = [256, 128], strides = [1, 1]} : vector<256x256xbf16> to vector<256x128xbf16>
    %7 = arith.mulf %3, %3 : vector<8x256xf32>
    %8 = arith.mulf %4, %4 : vector<8x256xf32>
    %9 = arith.mulf %3, %4 : vector<8x256xf32>
    %10 = tpu.concatenate %3, %4, %7, %8, %9 in 0 : vector<8x256xf32>, vector<8x256xf32>, vector<8x256xf32>, vector<8x256xf32>, vector<8x256xf32> -> vector<40x256xf32>
    %11 = arith.truncf %10 : vector<40x256xf32> to vector<40x256xbf16>
    %12 = arith.extf %11 : vector<40x256xbf16> to vector<40x256xf32>
    %13 = arith.subf %10, %12 : vector<40x256xf32>
    %14 = arith.truncf %13 : vector<40x256xf32> to vector<40x256xbf16>
    %cst = arith.constant dense<0.000000e+00> : vector<40x256xf32>
    %15 = tpu.matmul %11, %5, %cst {dimension_numbers = #tpu.dot_dimension_numbers<[1], [0], [0], [1], [0, 0, 1, 1], [], []>} : vector<40x256xbf16>, vector<256x256xbf16>, vector<40x256xf32> -> vector<40x256xf32>
    %cst_6 = arith.constant dense<0.000000e+00> : vector<40x128xf32>
    %16 = tpu.matmul %14, %6, %cst_6 {dimension_numbers = #tpu.dot_dimension_numbers<[1], [0], [0], [1], [0, 0, 1, 1], [], []>} : vector<40x256xbf16>, vector<256x128xbf16>, vector<40x128xf32> -> vector<40x128xf32>
    %17 = vector.extract_strided_slice %15 {offsets = [0, 0], sizes = [40, 128], strides = [1, 1]} : vector<40x256xf32> to vector<40x128xf32>
    %18 = vector.extract_strided_slice %15 {offsets = [0, 128], sizes = [40, 128], strides = [1, 1]} : vector<40x256xf32> to vector<40x128xf32>
    %19 = arith.addf %17, %18 : vector<40x128xf32>
    %20 = arith.addf %19, %16 : vector<40x128xf32>
    %21 = vector.extract_strided_slice %20 {offsets = [0, 0], sizes = [8, 128], strides = [1, 1]} : vector<40x128xf32> to vector<8x128xf32>
    %22 = vector.extract_strided_slice %20 {offsets = [8, 0], sizes = [8, 128], strides = [1, 1]} : vector<40x128xf32> to vector<8x128xf32>
    %23 = vector.extract_strided_slice %20 {offsets = [16, 0], sizes = [8, 128], strides = [1, 1]} : vector<40x128xf32> to vector<8x128xf32>
    %24 = vector.extract_strided_slice %20 {offsets = [24, 0], sizes = [8, 128], strides = [1, 1]} : vector<40x128xf32> to vector<8x128xf32>
    %25 = vector.extract_strided_slice %20 {offsets = [32, 0], sizes = [8, 128], strides = [1, 1]} : vector<40x128xf32> to vector<8x128xf32>
    %26 = arith.mulf %21, %21 : vector<8x128xf32>
    %27 = arith.subf %23, %26 : vector<8x128xf32>
    %28 = arith.mulf %22, %22 : vector<8x128xf32>
    %29 = arith.subf %24, %28 : vector<8x128xf32>
    %30 = arith.mulf %21, %22 : vector<8x128xf32>
    %31 = arith.subf %25, %30 : vector<8x128xf32>
    %cst_7 = arith.constant 2.000000e+00 : f32
    %32 = vector.broadcast %cst_7 : f32 to vector<8x128xf32>
    %33 = arith.mulf %32, %21 : vector<8x128xf32>
    %34 = arith.mulf %33, %22 : vector<8x128xf32>
    %cst_8 = arith.constant 9.99999974E-5 : f32
    %35 = vector.broadcast %cst_8 : f32 to vector<8x128xf32>
    %36 = arith.addf %34, %35 : vector<8x128xf32>
    %cst_9 = arith.constant 2.000000e+00 : f32
    %37 = vector.broadcast %cst_9 : f32 to vector<8x128xf32>
    %38 = arith.mulf %37, %31 : vector<8x128xf32>
    %cst_10 = arith.constant 8.99999984E-4 : f32
    %39 = vector.broadcast %cst_10 : f32 to vector<8x128xf32>
    %40 = arith.addf %38, %39 : vector<8x128xf32>
    %41 = arith.mulf %36, %40 : vector<8x128xf32>
    %42 = arith.mulf %21, %21 : vector<8x128xf32>
    %43 = arith.mulf %22, %22 : vector<8x128xf32>
    %44 = arith.addf %42, %43 : vector<8x128xf32>
    %cst_11 = arith.constant 9.99999974E-5 : f32
    %45 = vector.broadcast %cst_11 : f32 to vector<8x128xf32>
    %46 = arith.addf %44, %45 : vector<8x128xf32>
    %47 = arith.addf %27, %29 : vector<8x128xf32>
    %cst_12 = arith.constant 8.99999984E-4 : f32
    %48 = vector.broadcast %cst_12 : f32 to vector<8x128xf32>
    %49 = arith.addf %47, %48 : vector<8x128xf32>
    %50 = arith.mulf %46, %49 : vector<8x128xf32>
    %51 = tpu.reciprocal %50 {approx = true} : vector<8x128xf32> -> vector<8x128xf32>
    %52 = arith.mulf %50, %51 : vector<8x128xf32>
    %cst_13 = arith.constant 2.000000e+00 : f32
    %53 = vector.broadcast %cst_13 : f32 to vector<8x128xf32>
    %54 = arith.subf %53, %52 : vector<8x128xf32>
    %55 = arith.mulf %51, %54 : vector<8x128xf32>
    %56 = arith.mulf %41, %55 : vector<8x128xf32>
    %57 = tpu.iota {dimensions = array<i32: 1>} : vector<8x128xi32>
    %c100_i32 = arith.constant 100 : i32
    %58 = vector.broadcast %c100_i32 : i32 to vector<8x128xi32>
    %59 = arith.cmpi slt, %57, %58 : vector<8x128xi32>
    %cst_14 = arith.constant 0.000000e+00 : f32
    %60 = vector.broadcast %cst_14 : f32 to vector<8x128xf32>
    %61 = arith.select %59, %56, %60 : vector<8x128xi1>, vector<8x128xf32>
    %c1_i32 = arith.constant 1 : i32
    %62 = arith.muli %arg0, %c1_i32 : i32
    %63 = arith.addi %62, %arg1 : i32
    %c8_i32 = arith.constant 8 : i32
    %64 = arith.muli %63, %c8_i32 : i32
    %c8_i32_15 = arith.constant 8 : i32
    %65 = arith.addi %64, %c8_i32_15 : i32
    %c4_i32 = arith.constant 4 : i32
    %66 = arith.cmpi sgt, %65, %c4_i32 : i32
    %67 = arith.extui %66 : i1 to i32
    %c0_i32_16 = arith.constant 0 : i32
    %68 = arith.cmpi ne, %67, %c0_i32_16 : i32
    scf.if %68 {
      %73 = tpu.iota {dimensions = array<i32: 0>} : vector<8x128xi32>
      %74 = vector.broadcast %64 : i32 to vector<8x128xi32>
      %75 = arith.addi %74, %73 : vector<8x128xi32>
      %c4_i32_20 = arith.constant 4 : i32
      %76 = vector.broadcast %c4_i32_20 : i32 to vector<8x128xi32>
      %77 = arith.cmpi slt, %75, %76 : vector<8x128xi32>
      %cst_21 = arith.constant 0.000000e+00 : f32
      %78 = vector.broadcast %cst_21 : f32 to vector<8x128xf32>
      %79 = arith.select %77, %61, %78 : vector<8x128xi1>, vector<8x128xf32>
      %c0_22 = arith.constant 0 : index
      %c0_23 = arith.constant 0 : index
      %c0_24 = arith.constant 0 : index
      %80 = vector.load %arg5[%c0_22, %c0_23, %c0_24] : memref<1x1x128xf32, #tpu.memory_space<vmem>>, vector<1x1x128xf32>
      %cst_25 = arith.constant dense<0.000000e+00> : vector<128xf32>
      %81 = vector.multi_reduction <add>, %79, %cst_25 [0] : vector<8x128xf32> to vector<128xf32>
      %82 = vector.shape_cast %81 : vector<128xf32> to vector<1x128xf32>
      %83 = vector.shape_cast %82 : vector<1x128xf32> to vector<1x1x128xf32>
      %84 = arith.addf %80, %83 : vector<1x1x128xf32>
      %c0_26 = arith.constant 0 : index
      %c0_27 = arith.constant 0 : index
      %c0_28 = arith.constant 0 : index
      %85 = vector.load %arg5[%c0_26, %c0_27, %c0_28] : memref<1x1x128xf32, #tpu.memory_space<vmem>>, vector<1x1x128xf32>
      tpu.vector_store %arg5[%c0_26, %c0_27, %c0_28], %84 {strides = array<i32>} : memref<1x1x128xf32, #tpu.memory_space<vmem>>, vector<1x1x128xf32>,
    } else {
    }
    %c8_i32_17 = arith.constant 8 : i32
    %69 = arith.addi %64, %c8_i32_17 : i32
    %c4_i32_18 = arith.constant 4 : i32
    %70 = arith.cmpi sle, %69, %c4_i32_18 : i32
    %71 = arith.extui %70 : i1 to i32
    %c0_i32_19 = arith.constant 0 : i32
    %72 = arith.cmpi ne, %71, %c0_i32_19 : i32
    scf.if %72 {
      %c0_20 = arith.constant 0 : index
      %c0_21 = arith.constant 0 : index
      %c0_22 = arith.constant 0 : index
      %73 = vector.load %arg5[%c0_20, %c0_21, %c0_22] : memref<1x1x128xf32, #tpu.memory_space<vmem>>, vector<1x1x128xf32>
      %cst_23 = arith.constant dense<0.000000e+00> : vector<128xf32>
      %74 = vector.multi_reduction <add>, %61, %cst_23 [0] : vector<8x128xf32> to vector<128xf32>
      %75 = vector.shape_cast %74 : vector<128xf32> to vector<1x128xf32>
      %76 = vector.shape_cast %75 : vector<1x128xf32> to vector<1x1x128xf32>
      %77 = arith.addf %73, %76 : vector<1x1x128xf32>
      %c0_24 = arith.constant 0 : index
      %c0_25 = arith.constant 0 : index
      %c0_26 = arith.constant 0 : index
      %78 = vector.load %arg5[%c0_24, %c0_25, %c0_26] : memref<1x1x128xf32, #tpu.memory_space<vmem>>, vector<1x1x128xf32>
      tpu.vector_store %arg5[%c0_24, %c0_25, %c0_26], %77 {strides = array<i32>} : memref<1x1x128xf32, #tpu.memory_space<vmem>>, vector<1x1x128xf32>,
    } else {
    }
    return
  }
  func.func @transform_1(%arg0: i32, %arg1: i32) -> (i32, i32) {
    %c1_i32 = arith.constant 1 : i32
    %0 = arith.muli %arg0, %c1_i32 : i32
    %1 = arith.addi %0, %arg1 : i32
    %c0_i32 = arith.constant 0 : i32
    %c0_i32_0 = arith.constant 0 : i32
    return %1, %c0_i32 : i32, i32
  }
  func.func @transform_2(%arg0: i32, %arg1: i32) -> (i32, i32) {
    %c1_i32 = arith.constant 1 : i32
    %0 = arith.muli %arg0, %c1_i32 : i32
    %1 = arith.addi %0, %arg1 : i32
    %c0_i32 = arith.constant 0 : i32
    %c0_i32_0 = arith.constant 0 : i32
    return %1, %c0_i32 : i32, i32
  }
  func.func @transform_3(%arg0: i32, %arg1: i32) -> (i32, i32, i32) {
    %c0_i32 = arith.constant 0 : i32
    %c0_i32_0 = arith.constant 0 : i32
    %c0_i32_1 = arith.constant 0 : i32
    return %arg0, %c0_i32, %c0_i32_0 : i32, i32, i32
  }
}

</mosaic_0001>

<bundles_post_ra>
// kernel: tpu_custom_call.1
= control target key start
LH: loop header
LB: loop body
LE: loop exit
PB: predicated region body
PF: predicated region fallthrough
CT: control target
= control target key end

     0   :  { %8 = vsyncpa [#allocation5], 0  ;;  %s610_s0 = inlined_call_operand.hbm [shape: bf16[256,256], index: 0, kind: input, shape index: {}]   ;;  %s611_s1 = inlined_call_operand.hbm [shape: f32[8,256], index: 1, kind: input, shape index: {}]   ;;  %s612_s2 = inlined_call_operand.hbm [shape: f32[8,256], index: 2, kind: input, shape index: {}]   ;;  %s613_s3 = inlined_call_operand.hbm [shape: f32[1,1,128], index: 3, kind: output, shape index: {}]  }
   0x1   :  { %9 = vsyncpa [#allocation8], 0 }
   0x2   :  { %10 = vsyncpa [#allocation6], 0  ;;  %s501_s12 = smov [#allocation4]   ;;  %s502_s14 = smov [#allocation7]  }
   0x3   :  { %s21_s13 = sshll.u32 %s501_s12, 4  ;;  %s35_s15 = sshll.u32 %s502_s14, 4  ;;  %s22_s13 = int_to_ptr.vmem [resolvable:$true] %s21_s13  ;;  %s36_s15 = int_to_ptr.vmem [resolvable:$true] %s35_s15 }
   0x4   :  { %s427_s18 = scalar_lea.hbm %s611_s1, 256 }
   0x5   :  { %p428_p0 = scmp.ne.s32.totalorder %s611_s1, %s427_s18  ;;  %p431_p1 = scmp.lt.u32.totalorder %s427_s18, %s611_s1 }
   0x7   :  { %p433_p2 = pnand %p431_p1, %p428_p0 }
   0x9   :  { %436 = shalt.err (!%p433_p2)
}
   0xa   :  { %s437_s23 = scalar_lea.vmem %s22_s13, 256  ;;  %p442_p4 = scmp.lt.s32.totalorder %s22_s13, %s22_s13 }
   0xb   :  { %p438_p3 = scmp.ne.s32.totalorder %s22_s13, %s437_s23  ;;  %p443_p5 = scmp.lt.s32.totalorder %s437_s23, %s437_s23 }
   0xd   :  { %p444_p6 = por %p443_p5, %p442_p4 }
   0xf   :  { %p445_p7 = pnand %p444_p6, %p438_p3 }
  0x11   :  { %448 = shalt.err (!%p445_p7)
}
  0x12   :  { %24 = dma.hbm_to_vmem [thread:$0]  %s611_s1, 256, %s22_s13, [#allocation5]  }
  0x13   :  { %s449_s28 = scalar_lea.hbm %s612_s2, 256 }
  0x14   :  { %p450_p8 = scmp.ne.s32.totalorder %s612_s2, %s449_s28  ;;  %p453_p9 = scmp.lt.u32.totalorder %s449_s28, %s612_s2 }
  0x16   :  { %p455_p10 = pnand %p453_p9, %p450_p8 }
  0x18   :  { %458 = shalt.err (!%p455_p10)
}
  0x19   :  { %s459_s6 = scalar_lea.vmem %s36_s15, 256  ;;  %p464_p12 = scmp.lt.s32.totalorder %s36_s15, %s36_s15 }
  0x1a   :  { %p460_p11 = scmp.ne.s32.totalorder %s36_s15, %s459_s6  ;;  %p465_p13 = scmp.lt.s32.totalorder %s459_s6, %s459_s6 }
  0x1c   :  { %p466_p0 = por %p465_p13, %p464_p12 }
  0x1e   :  { %p467_p1 = pnand %p466_p0, %p460_p11 }
  0x20   :  { %470 = shalt.err (!%p467_p1)
}
  0x21   :  { %38 = dma.hbm_to_vmem [thread:$0]  %s612_s2, 256, %s36_s15, [#allocation8]  }
  0x22   :  { %493 = dma.done.wait [#allocation5], 256  }
  0x23   :  { %494 = vsyncadd [#allocation5], 4294967040 }
  0x24   :  { %495 = dma.done.wait [#allocation8], 256  }
  0x25   :  { %496 = vsyncadd [#allocation8], 4294967040 }
  0x26   :  { %s57_s8 = sld [smem:[#allocation0]]   ;;  %v503_v0 = vmov 0.0   ;;  %s504_s9 = smov [#allocation2]  }
  0x27   :  { %52 = vst [vmem:[#allocation9] sm:$0x1] %v503_v0  ;;  %s65_s10 = sshll.u32 %s504_s9, 4  ;;  %s505_s11 = smov 256   ;;  %s66_s10 = int_to_ptr.vmem [resolvable:$true] %s65_s10 }
  0x28   :  { %69 = sst [smem:[#allocation11]] %s505_s11  ;;  %s506_s12 = smov 2  }
  0x29   :  { %71 = sst [smem:[#allocation11 + $0x1]] %s505_s11  ;;  %s507_s13 = smov 64  }
  0x2a   :  { %73 = sst [smem:[#allocation11 + $0x2]] %s506_s12  ;;  %s508_s16 = smov 128  }
  0x2b   :  { %75 = sst [smem:[#allocation11 + $0x3]] %s507_s13  ;;  %s509_s15 = smov 4  }
  0x2c   :  { %s376_s14 = sshll.u32 %s57_s8, 26  ;;  %77 = sst [smem:[#allocation11 + $0x4]] %s508_s16 }
  0x2d   :  { %s377_s2 = sadd.s32 134217728, %s376_s14  ;;  %79 = sst [smem:[#allocation11 + $0x5]] %s506_s12 }
  0x2e   :  { %81 = sst [smem:[#allocation11 + $0x6]] %s508_s16  ;;  %s510_s17 = smov [#allocation3]  }
  0x2f   :  { %83 = sst [smem:[#allocation11 + $0x7]] %s507_s13  ;;  %s511_s18 = smov [#allocation10]  }
  0x30   :  { %85 = sst [smem:[#allocation11 + $0x8]] %s509_s15 }
  0x31   :  { %87 = dma.general %s610_s0, 4096, %s66_s10, %s510_s17, %s511_s18, [#allocation11], %s377_s2, 0  }
  0x32   :  { %497 = dma.done.wait [#allocation3], 4096 }
  0x33   :  { %498 = vsyncadd [#allocation3], 4294963200  ;;  %v97_v1 = vld [vmem:[#allocation2 + $0x8] sm:$0xff]  ;;  %v96_v2 = vld [vmem:[#allocation2] sm:$0xff]  ;;  %s512_s0 = smov [#allocation9]  }
  0x34   :  { %v99_v3 = vld [vmem:[#allocation2 + $0x18] sm:$0xff]  ;;  %166 = vmatprep.subr.bf16.mxu0 %v97_v1  ;;  %v98_v4 = vld [vmem:[#allocation2 + $0x10] sm:$0xff]  ;;  %v101_v5 = vld [vmem:[#allocation2 + $0x28] sm:$0xff]  ;;  %s360_s21 = sshll.u32 %s512_s0, 4  ;;  %s361_s21 = int_to_ptr.vmem [resolvable:$true] %s360_s21 }
  0x35   :  { %167 = vmatpush1.bf16.msra.mxu0 %v96_v2  ;;  %v560_v6 = vld [vmem:[#allocation2 + $0x80] sm:$0xff]  ;;  %v563_v7 = vld [vmem:[#allocation2 + $0x90] sm:$0xff]  ;;  %v103_v9 = vld [vmem:[#allocation2 + $0x38] sm:$0xff]  ;;  %s471_s22 = scalar_lea.vmem %s361_s21, 16  ;;  %s475_s23 = scalar_lea.vmem %s361_s21, 32 }
  0x36   :  { %168 = vmatprep.subr.bf16.mxu0 %v99_v3  ;;  %379 = vmatprep.subr.bf16.mxu1 %v560_v6  ;;  %v100_v8 = vld [vmem:[#allocation2 + $0x20] sm:$0xff]  ;;  %v93_v11 = vld [vmem:[#allocation4 + $0x8] sm:$0xff]  ;;  %v102_v12 = vld [vmem:[#allocation2 + $0x30] sm:$0xff]  ;;  %p472_p2 = scmp.ne.s32.totalorder %s361_s21, %s471_s22  ;;  %p476_p3 = scmp.lt.s32.totalorder %s361_s21, %s361_s21 }
  0x37   :  { %380 = vmatpush3.bf16.msra.mxu1 %v96_v2  ;;  %v566_v10 = vld [vmem:[#allocation2 + $0xa0] sm:$0xff]  ;;  %v95_v13 = vld [vmem:[#allocation7 + $0x8] sm:$0xff]  ;;  %v105_v14 = vld [vmem:[#allocation2 + $0x48] sm:$0xff]  ;;  %v129_v28 = vmul.f32 %v93_v11, %v93_v11  ;;  %p477_p4 = scmp.lt.s32.totalorder %s475_s23, %s471_s22 }
  0x38   :  { %381 = vmatprep.subr.bf16.mxu1 %v563_v7  ;;  %v135_v15 = vpack.c.bf16 %v95_v13, %v93_v11  ;;  %v569_v16 = vld [vmem:[#allocation2 + $0xb0] sm:$0xff]  ;;  %v104_v19 = vld [vmem:[#allocation2 + $0x40] sm:$0xff]  ;;  %v107_v20 = vld [vmem:[#allocation2 + $0x58] sm:$0xff]  ;;  %v131_v29 = vmul.f32 %v95_v13, %v95_v13  ;;  %v133_v44 = vmul.f32 %v95_v13, %v93_v11 }
  0x39   :  { %169 = vmatpush1.bf16.msra.mxu0 %v98_v4  ;;  %v572_v23 = vld [vmem:[#allocation2 + $0xc0] sm:$0xff]  ;;  %v106_v25 = vld [vmem:[#allocation2 + $0x50] sm:$0xff]  ;;  %v109_v30 = vld [vmem:[#allocation2 + $0x68] sm:$0xff]  ;;  %p478_p5 = por %p477_p4, %p476_p3 }
  0x3a   :  { %170 = vmatprep.subr.bf16.mxu0 %v101_v5  ;;  %v141_v17 = vunpack.c.l.bf16 %v135_v15  ;;  %v143_v18 = vunpack.c.h.bf16 %v135_v15  ;;  %198 = vmatprep.mubr.bf16.mxu0 %v135_v15  ;;  %v92_v26 = vld [vmem:[#allocation4] sm:$0xff]  ;;  %v94_v27 = vld [vmem:[#allocation7] sm:$0xff]  ;;  %v579_v34 = vpack.c.bf16 %v131_v29, %v129_v28  ;;  %v111_v35 = vld [vmem:[#allocation2 + $0x78] sm:$0xff]  ;;  %v139_v52 = vpack.c.bf16 %v133_v44, %v133_v44 }
  0x3b   :  { %382 = vmatpush3.bf16.msra.mxu1 %v98_v4  ;;  %v575_v31 = vld [vmem:[#allocation2 + $0xd0] sm:$0xff]  ;;  %v577_v32 = vpack.c.bf16 %v94_v27, %v92_v26  ;;  %v108_v33 = vld [vmem:[#allocation2 + $0x60] sm:$0xff]  ;;  %v128_v39 = vmul.f32 %v92_v26, %v92_v26  ;;  %v130_v40 = vmul.f32 %v94_v27, %v94_v27  ;;  %v113_v45 = vld [vmem:[#allocation2 + $0x88] sm:$0xff]  ;;  %v132_v57 = vmul.f32 %v94_v27, %v92_v26  ;;  %p479_p6 = pnand %p478_p5, %p472_p2 }
  0x3c   :  { %383 = vmatprep.subr.bf16.mxu1 %v566_v10  ;;  %v151_v21 = vsub.f32 %v93_v11, %v141_v17  ;;  %v153_v22 = vsub.f32 %v95_v13, %v143_v18  ;;  %v582_v36 = vld [vmem:[#allocation2 + $0xe0] sm:$0xff]  ;;  %v110_v41 = vld [vmem:[#allocation2 + $0x70] sm:$0xff]  ;;  %v145_v42 = vunpack.c.l.bf16 %v579_v34  ;;  %v147_v43 = vunpack.c.h.bf16 %v579_v34  ;;  %v115_v53 = vld [vmem:[#allocation2 + $0x98] sm:$0xff] }
  0x3d   :  { %171 = vmatpush1.bf16.msra.mxu0 %v100_v8  ;;  %v140_v37 = vunpack.c.l.bf16 %v577_v32  ;;  %v142_v38 = vunpack.c.h.bf16 %v577_v32  ;;  %v126_v46 = vld [vmem:[#allocation2 + $0xf0] sm:$0xff]  ;;  %v136_v49 = vpack.c.bf16 %v130_v40, %v128_v39  ;;  %v149_v59 = vunpack.c.l.bf16 %v139_v52  ;;  %v117_v60 = vld [vmem:[#allocation2 + $0xa8] sm:$0xff]  ;;  %v119_v1 = vld [vmem:[#allocation2 + $0xb8] sm:$0xff] }
  0x3e   :  { %172 = vmatprep.subr.bf16.mxu0 %v103_v9  ;;  %v161_v24 = vpack.c.bf16 %v153_v22, %v151_v21  ;;  %v155_v50 = vsub.f32 %v129_v28, %v145_v42  ;;  %v157_v51 = vsub.f32 %v131_v29, %v147_v43  ;;  %v138_v63 = vpack.c.bf16 %v132_v57, %v132_v57  ;;  %v121_v5 = vld [vmem:[#allocation2 + $0xc8] sm:$0xff] }
  0x3f   :  { %384 = vmatpush3.bf16.msra.mxu1 %v100_v8  ;;  %v150_v47 = vsub.f32 %v92_v26, %v140_v37  ;;  %v152_v48 = vsub.f32 %v94_v27, %v142_v38  ;;  %v144_v55 = vunpack.c.l.bf16 %v136_v49  ;;  %v146_v56 = vunpack.c.h.bf16 %v136_v49  ;;  %v125_v9 = vld [vmem:[#allocation2 + $0xe8] sm:$0xff] }
  0x40   :  { %385 = vmatprep.subr.bf16.mxu1 %v569_v16  ;;  %259 = vmatprep.mubr.bf16.mxu1 %v161_v24  ;;  %v163_v58 = vpack.c.bf16 %v157_v51, %v155_v50  ;;  %v159_v0 = vsub.f32 %v133_v44, %v149_v59  ;;  %v148_v3 = vunpack.c.l.bf16 %v138_v63 }
  0x41   :  { %173 = vmatpush1.bf16.msra.mxu0 %v102_v12  ;;  %v160_v54 = vpack.c.bf16 %v152_v48, %v150_v47  ;;  %v154_v61 = vsub.f32 %v128_v39, %v144_v55  ;;  %v156_v62 = vsub.f32 %v130_v40, %v146_v56 }
  0x42   :  { %174 = vmatprep.subr.bf16.mxu0 %v105_v14  ;;  %v165_v4 = vpack.c.bf16 %v159_v0, %v159_v0 }
  0x43   :  { %386 = vmatpush3.bf16.msra.mxu1 %v102_v12  ;;  %v162_v2 = vpack.c.bf16 %v156_v62, %v154_v61 }
  0x44   :  { %387 = vmatprep.subr.bf16.mxu1 %v572_v23 }
  0x45   :  { %175 = vmatpush1.bf16.msra.mxu0 %v104_v19 }
  0x46   :  { %176 = vmatprep.subr.bf16.mxu0 %v107_v20 }
  0x47   :  { %388 = vmatpush3.bf16.msra.mxu1 %v104_v19 }
  0x48   :  { %389 = vmatprep.subr.bf16.mxu1 %v575_v31 }
  0x49   :  { %177 = vmatpush1.bf16.msra.mxu0 %v106_v25 }
  0x4a   :  { %178 = vmatprep.subr.bf16.mxu0 %v109_v30 }
  0x4b   :  { %390 = vmatpush3.bf16.msra.mxu1 %v106_v25 }
  0x4c   :  { %391 = vmatprep.subr.bf16.mxu1 %v582_v36 }
  0x4d   :  { %179 = vmatpush1.bf16.msra.mxu0 %v108_v33 }
  0x4e   :  { %180 = vmatprep.subr.bf16.mxu0 %v111_v35 }
  0x4f   :  { %392 = vmatpush3.bf16.msra.mxu1 %v108_v33 }
  0x50   :  { %393 = vmatprep.subr.bf16.mxu1 %v126_v46 }
  0x51   :  { %181 = vmatpush1.bf16.msra.mxu0 %v110_v41 }
  0x52   :  { %182 = vmatprep.subr.bf16.mxu0 %v113_v45 }
  0x53   :  { %394 = vmatpush3.bf16.msra.mxu1 %v110_v41 }
  0x55   :  { %183 = vmatpush1.bf16.msra.mxu0 %v560_v6  ;;  %v158_v6 = vsub.f32 %v132_v57, %v148_v3  ;;  %v315_v3 = vlaneseq }
  0x56   :  { %184 = vmatprep.subr.bf16.mxu0 %v115_v53  ;;  %260 = vmatmul.mubr.bf16.vlgmr.msra.gmra.mrb[0].mxu1 %v160_v54 }
  0x57   :  { %267 = vmatprep.mubr.bf16.mxu1 %v163_v58  ;;  %v164_v8 = vpack.c.bf16 %v158_v6, %v158_v6  ;;  %v316_v6 = vand.u32 127, %v315_v3 }
  0x59   :  { %185 = vmatpush1.bf16.msra.mxu0 %v563_v7  ;;  %v123_v7 = vld [vmem:[#allocation2 + $0xd8] sm:$0xff]  ;;  %vm317_vm0 = vcmp.lt.s32.totalorder %v316_v6, 100 }
  0x5a   :  { %186 = vmatprep.subr.bf16.mxu0 %v117_v60 }
  0x5d   :  { %187 = vmatpush1.bf16.msra.mxu0 %v566_v10  ;;  %v127_v10 = vld [vmem:[#allocation2 + $0xf8] sm:$0xff] }
  0x5e   :  { %188 = vmatprep.subr.bf16.mxu0 %v119_v1  ;;  %268 = vmatmul.mubr.bf16.gmra.mrb[4].mxu1 %v162_v2 }
  0x5f   :  { %275 = vmatprep.mubr.bf16.mxu1 %v165_v4 }
  0x61   :  { %189 = vmatpush1.bf16.msra.mxu0 %v569_v16 }
  0x62   :  { %190 = vmatprep.subr.bf16.mxu0 %v121_v5 }
  0x65   :  { %191 = vmatpush1.bf16.msra.mxu0 %v572_v23 }
  0x66   :  { %192 = vmatprep.subr.bf16.mxu0 %v123_v7  ;;  %276 = vmatmul.mubr.bf16.gmra.mrb[8].mxu1 %v164_v8  ;;  %v327_v8 = vshrl.u32 %v315_v3, 7 }
  0x68   :  { %vm330_vm1 = vcmp.lt.s32.totalorder %v327_v8, 4 }
  0x69   :  { %193 = vmatpush1.bf16.msra.mxu0 %v575_v31 }
  0x6a   :  { %194 = vmatprep.subr.bf16.mxu0 %v125_v9 }
  0x6d   :  { %195 = vmatpush1.bf16.msra.mxu0 %v582_v36 }
  0x6e   :  { %196 = vmatprep.subr.bf16.mxu0 %v127_v10 }
  0x71   :  { %197 = vmatpush1.bf16.msra.mxu0 %v126_v46 }
  0x74   :  { %199 = vmatmul.mubr.bf16.vlgmr.msra.gmra.mrb[0].mxu0 %v577_v32 }
  0x75   :  { %208 = vmatprep.mubr.bf16.mxu0 %v579_v34 }
  0x7c   :  { %209 = vmatmul.mubr.bf16.gmra.mrb[4].mxu0 %v136_v49 }
  0x7d   :  { %218 = vmatprep.mubr.bf16.mxu0 %v139_v52 }
  0x84   :  { %219 = vmatmul.mubr.bf16.gmra.mrb[8].mxu0 %v138_v63 }
 0x129   :  { %v395_v11 = vpop.f32.mrb[0].mxu1 }
 0x12a   :  { %v396_v12 = vpop.f32.mrb[1].mxu1 }
 0x12b   :  { %v397_v13 = vadd.f32 %v396_v12, %v395_v11  ;;  %v398_v14 = vpop.f32.mrb[2].mxu1 }
 0x12c   :  { %v399_v15 = vpop.f32.mrb[3].mxu1 }
 0x12d   :  { %v400_v16 = vadd.f32 %v399_v15, %v398_v14 }
 0x131   :  { %v401_v17 = vpop.f32.mrb[4].mxu1 }
 0x132   :  { %v402_v18 = vpop.f32.mrb[5].mxu1 }
 0x133   :  { %v403_v19 = vadd.f32 %v402_v18, %v401_v17  ;;  %v404_v20 = vpop.f32.mrb[6].mxu1  ;;  %v332_v18 = vld [vmem:[#allocation9] sm:$0x1] }
 0x134   :  { %v405_v21 = vpop.f32.mrb[7].mxu1 }
 0x135   :  { %v406_v22 = vadd.f32 %v405_v21, %v404_v20 }
 0x139   :  { %v407_v23 = vpop.f32.mrb[8].mxu1 }
 0x13a   :  { %v408_v24 = vpop.f32.mrb[9].mxu1 }
 0x13b   :  { %v409_v25 = vadd.f32 %v408_v24, %v407_v23  ;;  %v410_v26 = vpop.f32.mrb[10].mxu1 }
 0x13c   :  { %v411_v27 = vpop.f32.mrb[11].mxu1 }
 0x147   :  { %v200_v28 = vpop.f32.mrb[0].mxu0 }
 0x148   :  { %v202_v29 = vpop.f32.mrb[1].mxu0 }
 0x149   :  { %v283_v30 = vadd.f32 %v202_v29, %v200_v28  ;;  %v204_v31 = vpop.f32.mrb[2].mxu0 }
 0x14a   :  { %v206_v32 = vpop.f32.mrb[3].mxu0 }
 0x14b   :  { %v288_v33 = vadd.f32 %v397_v13, %v283_v30  ;;  %v284_v34 = vadd.f32 %v206_v32, %v204_v31 }
 0x14d   :  { %v299_v35 = vmul.f32 2.0, %v288_v33  ;;  %v289_v36 = vadd.f32 %v400_v16, %v284_v34  ;;  %v293_v39 = vmul.f32 %v288_v33, %v288_v33 }
 0x14f   :  { %v300_v37 = vmul.f32 %v299_v35, %v289_v36  ;;  %v210_v38 = vpop.f32.mrb[4].mxu0  ;;  %v295_v40 = vmul.f32 %v289_v36, %v289_v36  ;;  %v297_v41 = vmul.f32 %v289_v36, %v288_v33 }
 0x150   :  { %v212_v42 = vpop.f32.mrb[5].mxu0 }
 0x151   :  { %v285_v43 = vadd.f32 %v212_v42, %v210_v38  ;;  %v214_v44 = vpop.f32.mrb[6].mxu0  ;;  %v305_v45 = vadd.f32 %v295_v40, %v293_v39  ;;  %v301_v0 = vadd.f32 0.0001, %v300_v37 }
 0x152   :  { %v216_v46 = vpop.f32.mrb[7].mxu0 }
 0x153   :  { %v290_v47 = vadd.f32 %v403_v19, %v285_v43  ;;  %v286_v48 = vadd.f32 %v216_v46, %v214_v44  ;;  %v306_v58 = vadd.f32 0.0001, %v305_v45 }
 0x155   :  { %v294_v49 = vsub.f32 %v290_v47, %v293_v39  ;;  %v291_v50 = vadd.f32 %v406_v22, %v286_v48 }
 0x157   :  { %v296_v51 = vsub.f32 %v291_v50, %v295_v40  ;;  %v220_v52 = vpop.f32.mrb[8].mxu0 }
 0x158   :  { %v222_v53 = vpop.f32.mrb[9].mxu0 }
 0x159   :  { %v307_v54 = vadd.f32 %v296_v51, %v294_v49  ;;  %v287_v55 = vadd.f32 %v222_v53, %v220_v52  ;;  %v224_v56 = vpop.f32.mrb[10].mxu0 }
 0x15a   :  { %v225_v57 = vpop.f32.mrb[11].mxu0 }
 0x15b   :  { %v308_v59 = vadd.f32 0.0009, %v307_v54  ;;  %v292_v60 = vadd.f32 %v409_v25, %v287_v55 }
 0x15d   :  { %v309_v61 = vmul.f32 %v308_v59, %v306_v58  ;;  %v298_v62 = vsub.f32 %v292_v60, %v297_v41 }
 0x15f   :  { %425 = vrcp.f32 %v309_v61  ;;  %v302_v63 = vmul.f32 2.0, %v298_v62 }
 0x161   :  { %v303_v1 = vadd.f32 0.0009, %v302_v63 }
 0x163   :  { %v304_v2 = vmul.f32 %v303_v1, %v301_v0 }
 0x169   :  { %v426_v4 = vpop.eup %425 }
 0x16a   :  { %v311_v5 = vmul.f32 %v426_v4, %v309_v61 }
 0x16c   :  { %v312_v7 = vsub.f32 2.0, %v311_v5 }
 0x16e   :  { %v313_v9 = vmul.f32 %v426_v4, %v312_v7 }
 0x170   :  { %v314_v10 = vmul.f32 %v313_v9, %v304_v2 }
 0x172   :  { %v318_v11 = vsel %vm317_vm0, %v314_v10, 0.0 }
 0x173   :  { %v331_v12 = vsel %vm330_vm1, %v318_v11, 0.0 }
 0x174   :  { %v333_v13 = vrot.slane %v331_v12, 4 }
 0x176   :  { %v334_v14 = vadd.f32 %v333_v13, %v331_v12 }
 0x178   :  { %v335_v15 = vrot.slane %v334_v14, 2 }
 0x17a   :  { %v336_v16 = vadd.f32 %v335_v15, %v334_v14 }
 0x17c   :  { %v337_v17 = vrot.slane %v336_v16, 1 }
 0x17e   :  { %v338_v19 = vadd.f32 %v337_v17, %v336_v16 }
 0x180   :  { %v339_v20 = vadd.f32 %v338_v19, %v332_v18 }
 0x182   :  { %340 = vst [vmem:[#allocation9] sm:$0x1] %v339_v20 }
 0x183   :  { %482 = shalt.err (!%p479_p6)
}
 0x184   :  { %s483_s26 = scalar_lea.hbm %s613_s3, 16 }
 0x185   :  { %p484_p7 = scmp.ne.s32.totalorder %s613_s3, %s483_s26  ;;  %p487_p8 = scmp.lt.u32.totalorder %s483_s26, %s613_s3 }
 0x187   :  { %p489_p9 = pnand %p487_p8, %p484_p7 }
 0x189   :  { %492 = shalt.err (!%p489_p9)
}
 0x18a   :  { %363 = dma.vmem_to_hbm [thread:$0]  %s361_s21, 16, %s613_s3, [#allocation6]  }
 0x18b   :  { %499 = dma.done.wait [#allocation6], 16  }
 0x18c   :  { %500 = vsyncadd [#allocation6], 4294967280 }
 0x18d   :  { %367 = vsyncpa [#allocation5], 1 }
 0x18e   :  { %368 = vsyncpa [#allocation8], 1 }
 0x18f   :  { %369 = vsyncpa [#allocation6], 1 }
 0x190   :  { %370 = vsyncmov [#allocation3] }
 0x193   :  { %s371_s6 = vpop.sfrf %370 }
 0x194   :  { %p378_p10 = scmp.ne.s32.totalorder %s371_s6, 0 }
 0x196   :  { %375 = shalt.err (%p378_p10)  }

</bundles_post_ra>
